<compile_context>
chip_gen: v6e
topology: v6e:2x2x1
jax: 0.10.0
libtpu: 0.0.40
codegen_flags: <defaults>
</compile_context>

<pallas_src>
import jax
import jax.numpy as jnp
from jax import lax
from jax.experimental import pallas as pl
from jax.experimental.pallas import tpu as pltpu


# --------------------------- Pallas kernels ---------------------------------------

def conv_matmul_kernel(p_ref, w_ref, b_ref, out_ref):
    # p_ref  : (tile_m, 9*C) bf16   im2col patches (row = one output pixel)
    # w_ref  : (9*C, C)     bf16   conv weight, HWIO flattened over (kh, kw, ci)
    # b_ref  : (1, C)       f32    bias
    # out_ref: (tile_m, C)  f32
    out_ref[...] = (
        jnp.dot(p_ref[...], w_ref[...], preferred_element_type=jnp.float32)
        + b_ref[...]
    )


def avg_pool_kernel(xs_ref, out_ref):
    # xs_ref : (1, 2, 2, tile_h, wo, C) parity planes,
    #          xs[:, r, s, i, j, :] == x[:, 2*i + r, 2*j + s, :]
    # out_ref: (1, tile_h, wo, C)
    out_ref[...] = (xs_ref[:, 0, 0] + xs_ref[:, 0, 1]
                    + xs_ref[:, 1, 0] + xs_ref[:, 1, 1]) * 0.25


# --------------------------- wrapper ------------------------------------------------

def _pick_divisor(total, preferred):
    for t in preferred:
        if 0 < t <= total and total % t == 0:
            return t
    return total


def downsample_forward(x, weight=None, bias=None, *, with_conv, tile_m=None, tile_h=None):
    """Pallas forward for Downsample.

    x: (B, C, H, W) f32 (NCHW, like the torch module).
    weight: torch-layout (C, C, 3, 3) f32; bias: (C,) f32 (only for with_conv=True).
    Returns (B, C, H//2, W//2) f32.
    """
    B, C, H, W = x.shape
    assert H % 2 == 0 and W % 2 == 0, "even spatial dims expected"
    ho, wo = H // 2, W // 2
    x_nhwc = jnp.transpose(x, (0, 2, 3, 1))            # channels -> lane dim

    cparams = pltpu.CompilerParams(
        dimension_semantics=("parallel",) if with_conv else ("parallel", "parallel"),
        vmem_limit_bytes=32 * 1024 * 1024,
    )

    if with_conv:
        # --- wrapper-side im2col (pure data movement), bf16 cast ONCE -------------
        xb = x_nhwc.astype(jnp.bfloat16)
        # F.pad(x, (0,1,0,1)): one zero row at the bottom, one zero col on the right.
        x_pad = jnp.pad(xb, ((0, 0), (0, 1), (0, 1), (0, 0)))     # (B, H+1, W+1, C)
        # tap[kh][kw][b, i, j, :] == x_pad[b, 2*i + kh, 2*j + kw, :]
        taps = [x_pad[:, kh:kh + 2 * ho:2, kw:kw + 2 * wo:2, :]
                for kh in range(3) for kw in range(3)]
        patches = jnp.stack(taps, axis=3).reshape(B * ho * wo, 9 * C)   # (M, K) bf16

        # torch OIHW -> HWIO -> (9*C_in, C_out); flattening order (kh, kw, ci) matches
        # the patch flattening (tap index kh*3+kw, then ci).
        w2 = jnp.transpose(weight, (2, 3, 1, 0)).reshape(9 * C, C).astype(jnp.bfloat16)
        b2 = bias.reshape(1, C).astype(jnp.float32)

        M, K = patches.shape
        if tile_m is None:
            # big-M tiles fill the MXU; on v7x pick a tile_m giving >=2 parallel steps.
            tile_m = _pick_divisor(M, (512, 256, 128, 64, 32, 16, 8))
        assert M % tile_m == 0

        out2 = pl.pallas_call(
            conv_matmul_kernel,
            out_shape=jax.ShapeDtypeStruct((M, C), jnp.float32),
            grid_spec=pltpu.PrefetchScalarGridSpec(
                num_scalar_prefetch=0,
                grid=(M // tile_m,),
                in_specs=[
                    pl.BlockSpec((tile_m, K), lambda i: (i, 0)),
                    pl.BlockSpec((K, C), lambda i: (0, 0)),      # resident weights
                    pl.BlockSpec((1, C), lambda i: (0, 0)),      # resident bias
                ],
                out_specs=pl.BlockSpec((tile_m, C), lambda i: (i, 0)),
            ),
            compiler_params=cparams,
        )(patches, w2, b2)
        out_nhwc = out2.reshape(B, ho, wo, C)
    else:
        # parity planes: xs[:, r, s, i, j, :] = x[:, 2*i+r, 2*j+s, :]; in-kernel reads
        # are leading-dim selects only (last two dims (wo, C) stay aligned & dense).
        xs = (x_nhwc.reshape(B, ho, 2, wo, 2, C)
                    .transpose(0, 2, 4, 1, 3, 5))                 # (B, 2, 2, ho, wo, C)
        if tile_h is None:
            # biggest row tile whose f32 input block stays <= ~4 MiB
            budget = 4 * 1024 * 1024
            max_rows = max(1, budget // (4 * wo * C * 4))
            tile_h = _pick_divisor(ho, tuple(range(min(ho, max_rows), 0, -1)))
        assert ho % tile_h == 0

        out_nhwc = pl.pallas_call(
            avg_pool_kernel,
            out_shape=jax.ShapeDtypeStruct((B, ho, wo, C), jnp.float32),
            grid_spec=pltpu.PrefetchScalarGridSpec(
                num_scalar_prefetch=0,
                grid=(B, ho // tile_h),
                in_specs=[pl.BlockSpec((1, 2, 2, tile_h, wo, C),
                                       lambda b, h: (b, 0, 0, h, 0, 0))],
                out_specs=pl.BlockSpec((1, tile_h, wo, C),
                                       lambda b, h: (b, h, 0, 0)),
            ),
            compiler_params=cparams,
        )(xs)

    return jnp.transpose(out_nhwc, (0, 3, 1, 2))                   # back to NCHW


# --------------------------- pure-JAX references ------------------------------------

def _conv_downsample_ref(x, weight, bias, dtype=jnp.float32):
    x_pad = jnp.pad(x, ((0, 0), (0, 0), (0, 1), (0, 1)))
    out = lax.conv_general_dilated(
        x_pad.astype(dtype), weight.astype(dtype),
        window_strides=(2, 2), padding="VALID",
        dimension_numbers=("NCHW", "OIHW", "NCHW"),
        preferred_element_type=jnp.float32)
    return out + bias[None, :, None, None]


def _avg_pool_ref(x):
    B, C, H, W = x.shape
    return x.reshape(B, C, H // 2, 2, W // 2, 2).mean(axis=(3, 5))


if __name__ == "__main__":
    # C=128 keeps the channel (lane) dim fully dense — realistic for this VQVAE module.
    B, C, H, W = 2, 128, 16, 16
    key = jax.random.PRNGKey(0)
    kx, kw, kb = jax.random.split(key, 3)
    x = jax.random.normal(kx, (B, C, H, W), jnp.float32)
    weight = 0.05 * jax.random.normal(kw, (C, C, 3, 3), jnp.float32)   # torch OIHW
    bias = 0.05 * jax.random.normal(kb, (C,), jnp.float32)

    # with_conv=True branch: pad (0,1,0,1) + Conv2d(C, C, 3, stride=2)
    out_conv = downsample_forward(x, weight, bias, with_conv=True)
    jax.block_until_ready(out_conv)
    assert out_conv.shape == (B, C, H // 2, W // 2) and out_conv.dtype == jnp.float32
    # tight check vs a precision-matched (bf16 operands, f32 accum) reference
    ref_bf16 = _conv_downsample_ref(x, weight, bias, dtype=jnp.bfloat16)
    err_tight = float(jnp.max(jnp.abs(out_conv - ref_bf16)))
    assert err_tight < 3e-2, f"conv branch mismatch vs bf16 ref: {err_tight}"
    # loose check vs the full-f32 PyTorch-equivalent conv (bf16 operand rounding only)
    ref_f32 = _conv_downsample_ref(x, weight, bias, dtype=jnp.float32)
    err_loose = float(jnp.max(jnp.abs(out_conv - ref_f32)))
    assert err_loose < 3e-1, f"conv branch mismatch vs f32 ref: {err_loose}"

    # with_conv=False branch: avg_pool2d(kernel_size=2, stride=2) — exact f32 path
    out_pool = downsample_forward(x, with_conv=False)
    jax.block_until_ready(out_pool)
    assert out_pool.shape == (B, C, H // 2, W // 2) and out_pool.dtype == jnp.float32
    err_pool = float(jnp.max(jnp.abs(out_pool - _avg_pool_ref(x))))
    assert err_pool < 1e-5, f"avg_pool branch mismatch: {err_pool}"

    print("KERNEL_OK")
</pallas_src>

<mosaic_0001>
module attributes {stable_mosaic.version = 11 : i64} {
  func.func @conv_matmul_kernel(%arg0: i32, %arg1: memref<128x1152xbf16, #tpu.memory_space<vmem>>, %arg2: memref<1152x128xbf16, #tpu.memory_space<vmem>>, %arg3: memref<1x128xf32, #tpu.memory_space<vmem>>, %arg4: memref<128x128xf32, #tpu.memory_space<vmem>>) attributes {dimension_semantics = [#tpu.dimension_semantics<parallel>], iteration_bounds = array<i64: 1>, scalar_prefetch = 0 : i64, scratch_operands = 0 : i64, tpu.core_type = #tpu.core_type<tc>, window_params = [{transform_indices = @transform_0, window_bounds = array<i64: 128, 1152>}, {pipeline_mode = #tpu.pipeline_mode<synchronous>, transform_indices = @transform_1, window_bounds = array<i64: 1152, 128>}, {pipeline_mode = #tpu.pipeline_mode<synchronous>, transform_indices = @transform_2, window_bounds = array<i64: 1, 128>}, {transform_indices = @transform_3, window_bounds = array<i64: 128, 128>}]} {
    %c0 = arith.constant 0 : index
    %c0_0 = arith.constant 0 : index
    %0 = vector.load %arg1[%c0, %c0_0] : memref<128x1152xbf16, #tpu.memory_space<vmem>>, vector<128x1152xbf16>
    %c0_1 = arith.constant 0 : index
    %c0_2 = arith.constant 0 : index
    %1 = vector.load %arg2[%c0_1, %c0_2] : memref<1152x128xbf16, #tpu.memory_space<vmem>>, vector<1152x128xbf16>
    %cst = arith.constant dense<0.000000e+00> : vector<128x128xf32>
    %2 = tpu.matmul %0, %1, %cst {dimension_numbers = #tpu.dot_dimension_numbers<[1], [0], [0], [1], [0, 0, 1, 1], [], []>} : vector<128x1152xbf16>, vector<1152x128xbf16>, vector<128x128xf32> -> vector<128x128xf32>
    %c0_3 = arith.constant 0 : index
    %c0_4 = arith.constant 0 : index
    %3 = vector.load %arg3[%c0_3, %c0_4] : memref<1x128xf32, #tpu.memory_space<vmem>>, vector<1x128xf32>
    %4 = vector.broadcast %3 : vector<1x128xf32> to vector<128x128xf32>
    %5 = arith.addf %2, %4 : vector<128x128xf32>
    %c0_5 = arith.constant 0 : index
    %c0_6 = arith.constant 0 : index
    %6 = vector.load %arg4[%c0_5, %c0_6] : memref<128x128xf32, #tpu.memory_space<vmem>>, vector<128x128xf32>
    tpu.vector_store %arg4[%c0_5, %c0_6], %5 {strides = array<i32>} : memref<128x128xf32, #tpu.memory_space<vmem>>, vector<128x128xf32>,
    return
  }
  func.func @transform_0(%arg0: i32) -> (i32, i32) {
    %c0_i32 = arith.constant 0 : i32
    %c0_i32_0 = arith.constant 0 : i32
    return %arg0, %c0_i32 : i32, i32
  }
  func.func @transform_1(%arg0: i32) -> (i32, i32) {
    %c0_i32 = arith.constant 0 : i32
    %c0_i32_0 = arith.constant 0 : i32
    %c0_i32_1 = arith.constant 0 : i32
    return %c0_i32, %c0_i32_0 : i32, i32
  }
  func.func @transform_2(%arg0: i32) -> (i32, i32) {
    %c0_i32 = arith.constant 0 : i32
    %c0_i32_0 = arith.constant 0 : i32
    %c0_i32_1 = arith.constant 0 : i32
    return %c0_i32, %c0_i32_0 : i32, i32
  }
  func.func @transform_3(%arg0: i32) -> (i32, i32) {
    %c0_i32 = arith.constant 0 : i32
    %c0_i32_0 = arith.constant 0 : i32
    return %arg0, %c0_i32 : i32, i32
  }
}

</mosaic_0001>

<bundles_post_ra>
// kernel: tpu_custom_call.1
= control target key start
LH: loop header
LB: loop body
LE: loop exit
PB: predicated region body
PF: predicated region fallthrough
CT: control target
= control target key end

     0   :  { %8 = vsyncpa [#allocation3], 0  ;;  %s2504_s0 = inlined_call_operand.hbm [shape: bf16[128,1152], index: 0, kind: input, shape index: {}]   ;;  %s2505_s1 = inlined_call_operand.hbm [shape: bf16[1152,128], index: 1, kind: input, shape index: {}]   ;;  %s2506_s2 = inlined_call_operand.vmem [shape: f32[1,128], index: 2, kind: input, shape index: {}]   ;;  %s2507_s3 = inlined_call_operand.hbm [shape: f32[128,128], index: 3, kind: output, shape index: {}]  }
   0x1   :  { %9 = vsyncpa [#allocation6], 0 }
   0x2   :  { %10 = vsyncpa [#allocation4], 0  ;;  %s2310_s12 = smov [#allocation2]  }
   0x3   :  { %s16_s13 = sshll.u32 %s2310_s12, 4  ;;  %s17_s13 = int_to_ptr.vmem [resolvable:$true] %s16_s13 }
   0x4   :  { %s2252_s14 = scalar_lea.vmem %s17_s13, 9216  ;;  %p2257_p1 = scmp.lt.s32.totalorder %s17_s13, %s17_s13 }
   0x5   :  { %p2253_p0 = scmp.ne.s32.totalorder %s17_s13, %s2252_s14  ;;  %p2258_p2 = scmp.lt.s32.totalorder %s2252_s14, %s2252_s14 }
   0x7   :  { %p2259_p3 = por %p2258_p2, %p2257_p1 }
   0x9   :  { %p2260_p4 = pnand %p2259_p3, %p2253_p0 }
   0xb   :  { %2263 = shalt.err (!%p2260_p4)
}
   0xc   :  { %s2311_s15 = smov 576   ;;  %s2312_s16 = smov 36  }
   0xd   :  { %22 = dma.hbm_to_vmem [thread:$0]  %s2504_s0, 9216, %s17_s13, [#allocation3], %s2311_s15, %s2311_s15, %s2312_s16  }
   0xe   :  { %s2313_s19 = smov [#allocation5]  }
   0xf   :  { %s28_s20 = sshll.u32 %s2313_s19, 4  ;;  %s29_s20 = int_to_ptr.vmem [resolvable:$true] %s28_s20 }
  0x10   :  { %s2272_s21 = scalar_lea.vmem %s29_s20, 9216  ;;  %p2277_p6 = scmp.lt.s32.totalorder %s29_s20, %s29_s20 }
  0x11   :  { %p2273_p5 = scmp.ne.s32.totalorder %s29_s20, %s2272_s21  ;;  %p2278_p7 = scmp.lt.s32.totalorder %s2272_s21, %s2272_s21 }
  0x13   :  { %p2279_p8 = por %p2278_p7, %p2277_p6 }
  0x15   :  { %p2280_p9 = pnand %p2279_p8, %p2273_p5 }
  0x17   :  { %2283 = shalt.err (!%p2280_p9)
}
  0x18   :  { %s2314_s22 = smov 64   ;;  %s2315_s23 = smov 4  }
  0x19   :  { %34 = dma.hbm_to_vmem [thread:$0]  %s2505_s1, 9216, %s29_s20, [#allocation6], %s2314_s22, %s2314_s22, %s2315_s23  }
  0x1a   :  { %2304 = dma.done.wait [#allocation3], 9216  }
  0x1b   :  { %2305 = vsyncadd [#allocation3], 4294958080 }
  0x1c   :  { %2306 = dma.done.wait [#allocation6], 9216  }
  0x1d   :  { %2307 = vsyncadd [#allocation6], 4294958080  ;;  %v2068_v0 = vld [vmem:[#allocation5 + $0x78] sm:$0xff]   ;;  %v2072_v4 = vld [vmem:[#allocation5 + $0x70] sm:$0xff]  }
  0x1e   :  { %v2069_v1 = vld [vmem:[#allocation5 + $0xf8] sm:$0xff]   ;;  %1739 = vmatprep.subr.bf16.mxu0 %v2068_v0  ;;  %v2073_v5 = vld [vmem:[#allocation5 + $0xf0] sm:$0xff]   ;;  %v2076_v8 = vld [vmem:[#allocation5 + $0x68] sm:$0xff]  }
  0x1f   :  { %v2070_v2 = vld [vmem:[#allocation5 + $0x38] sm:$0xff]   ;;  %1803 = vmatprep.subr.bf16.mxu1 %v2069_v1  ;;  %v2074_v6 = vld [vmem:[#allocation5 + $0x30] sm:$0xff]   ;;  %v2077_v9 = vld [vmem:[#allocation5 + $0xe8] sm:$0xff]  }
  0x20   :  { %v2071_v3 = vld [vmem:[#allocation5 + $0xb8] sm:$0xff]   ;;  %1740 = vmatpush3.bf16.msra.mxu0 %v2070_v2  ;;  %v2075_v7 = vld [vmem:[#allocation5 + $0xb0] sm:$0xff]   ;;  %v2078_v10 = vld [vmem:[#allocation5 + $0x28] sm:$0xff]  }
  0x21   :  { %1804 = vmatpush3.bf16.msra.mxu1 %v2071_v3  ;;  %1741 = vmatprep.subr.bf16.mxu0 %v2072_v4  ;;  %v2079_v11 = vld [vmem:[#allocation5 + $0xa8] sm:$0xff]   ;;  %v2080_v12 = vld [vmem:[#allocation5 + $0x60] sm:$0xff]   ;;  %v2084_v16 = vld [vmem:[#allocation5 + $0x58] sm:$0xff]  }
  0x22   :  { %1805 = vmatprep.subr.bf16.mxu1 %v2073_v5  ;;  %v2081_v13 = vld [vmem:[#allocation5 + $0xe0] sm:$0xff]   ;;  %v2085_v17 = vld [vmem:[#allocation5 + $0xd8] sm:$0xff]   ;;  %v2088_v20 = vld [vmem:[#allocation5 + $0x50] sm:$0xff]  }
  0x23   :  { %v2082_v14 = vld [vmem:[#allocation5 + $0x20] sm:$0xff]   ;;  %v2086_v18 = vld [vmem:[#allocation5 + $0x18] sm:$0xff]   ;;  %v2089_v21 = vld [vmem:[#allocation5 + $0xd0] sm:$0xff]  }
  0x24   :  { %1742 = vmatpush3.bf16.msra.mxu0 %v2074_v6  ;;  %v2083_v15 = vld [vmem:[#allocation5 + $0xa0] sm:$0xff]   ;;  %v2087_v19 = vld [vmem:[#allocation5 + $0x98] sm:$0xff]   ;;  %v2090_v22 = vld [vmem:[#allocation5 + $0x10] sm:$0xff]  }
  0x25   :  { %1806 = vmatpush3.bf16.msra.mxu1 %v2075_v7  ;;  %1743 = vmatprep.subr.bf16.mxu0 %v2076_v8  ;;  %v2091_v23 = vld [vmem:[#allocation5 + $0x90] sm:$0xff]   ;;  %v2092_v24 = vld [vmem:[#allocation5 + $0x48] sm:$0xff]   ;;  %v2096_v28 = vld [vmem:[#allocation5 + $0x40] sm:$0xff]  }
  0x26   :  { %1807 = vmatprep.subr.bf16.mxu1 %v2077_v9  ;;  %v2093_v25 = vld [vmem:[#allocation5 + $0xc8] sm:$0xff]   ;;  %v2097_v29 = vld [vmem:[#allocation5 + $0xc0] sm:$0xff]   ;;  %v2106_v36 = vld [vmem:[#allocation5 + $0x178] sm:$0xff]  }
  0x27   :  { %v2094_v26 = vld [vmem:[#allocation5 + $0x8] sm:$0xff]   ;;  %v2098_v30 = vld [vmem:[#allocation5] sm:$0xff]   ;;  %v2107_v37 = vld [vmem:[#allocation5 + $0x1f8] sm:$0xff]  }
  0x28   :  { %1744 = vmatpush3.bf16.msra.mxu0 %v2078_v10  ;;  %v2095_v27 = vld [vmem:[#allocation5 + $0x88] sm:$0xff]   ;;  %v2099_v31 = vld [vmem:[#allocation5 + $0x80] sm:$0xff]   ;;  %v2108_v38 = vld [vmem:[#allocation5 + $0x138] sm:$0xff]  }
  0x29   :  { %1808 = vmatpush3.bf16.msra.mxu1 %v2079_v11  ;;  %1745 = vmatprep.subr.bf16.mxu0 %v2080_v12  ;;  %v2100_v32 = vld [vmem:[#allocation2] ss:$36 sps:$4 sm:$0xff]   ;;  %v2103_v34 = vld [vmem:[#allocation2 + $0x8] ss:$36 sps:$4 sm:$0xff]   ;;  %v2109_v39 = vld [vmem:[#allocation5 + $0x1b8] sm:$0xff]  }
  0x2a   :  { %1809 = vmatprep.subr.bf16.mxu1 %v2081_v13  ;;  %v2102_v33 = vld [vmem:[#allocation2 + $0x4] ss:$36 sps:$4 sm:$0xff]   ;;  %v2105_v35 = vld [vmem:[#allocation2 + $0xc] ss:$36 sps:$4 sm:$0xff]   ;;  %v2112_v41 = vld [vmem:[#allocation2 + $0x54] ss:$36 sps:$4 sm:$0xff]  }
  0x2b   :  { %1107 = vmatprep.mubr.bf16.mxu0 %v2102_v33  ;;  %1204 = vmatprep.mubr.bf16.mxu1 %v2105_v35  ;;  %v2110_v40 = vld [vmem:[#allocation2 + $0x4c] ss:$36 sps:$4 sm:$0xff]   ;;  %v2120_v48 = vld [vmem:[#allocation2 + $0x94] ss:$36 sps:$4 sm:$0xff]   ;;  %v2122_v49 = vld [vmem:[#allocation2 + $0x9c] ss:$36 sps:$4 sm:$0xff]  }
  0x2c   :  { %1746 = vmatpush3.bf16.msra.mxu0 %v2082_v14  ;;  %v2114_v42 = vld [vmem:[#allocation2 + $0x48] ss:$36 sps:$4 sm:$0xff]   ;;  %v2115_v43 = vld [vmem:[#allocation2 + $0x50] ss:$36 sps:$4 sm:$0xff]   ;;  %v2125_v51 = vld [vmem:[#allocation2 + $0x98] ss:$36 sps:$4 sm:$0xff]  }
  0x2d   :  { %1810 = vmatpush3.bf16.msra.mxu1 %v2083_v15  ;;  %1747 = vmatprep.subr.bf16.mxu0 %v2084_v16  ;;  %v2116_v44 = vld [vmem:[#allocation5 + $0x170] sm:$0xff]   ;;  %v2126_v52 = vld [vmem:[#allocation5 + $0x168] sm:$0xff]   ;;  %v2130_v56 = vld [vmem:[#allocation2 + $0xdc] ss:$36 sps:$4 sm:$0xff]  }
  0x2e   :  { %1811 = vmatprep.subr.bf16.mxu1 %v2085_v17  ;;  %v2117_v45 = vld [vmem:[#allocation5 + $0x1f0] sm:$0xff]   ;;  %v2127_v53 = vld [vmem:[#allocation5 + $0x1e8] sm:$0xff]   ;;  %v2134_v58 = vld [vmem:[#allocation2 + $0xd8] ss:$36 sps:$4 sm:$0xff]  }
  0x2f   :  { %v2118_v46 = vld [vmem:[#allocation5 + $0x130] sm:$0xff]   ;;  %v2128_v54 = vld [vmem:[#allocation5 + $0x128] sm:$0xff]   ;;  %v2135_v59 = vld [vmem:[#allocation2 + $0xe0] ss:$36 sps:$4 sm:$0xff]  }
  0x30   :  { %1748 = vmatpush3.bf16.msra.mxu0 %v2086_v18  ;;  %v2119_v47 = vld [vmem:[#allocation5 + $0x1b0] sm:$0xff]   ;;  %v2129_v55 = vld [vmem:[#allocation5 + $0x1a8] sm:$0xff]   ;;  %v2136_v60 = vld [vmem:[#allocation5 + $0x160] sm:$0xff]  }
  0x31   :  { %1812 = vmatpush3.bf16.msra.mxu1 %v2087_v19  ;;  %1749 = vmatprep.subr.bf16.mxu0 %v2088_v20  ;;  %v2124_v50 = vld [vmem:[#allocation2 + $0x90] ss:$36 sps:$4 sm:$0xff]   ;;  %v2132_v57 = vld [vmem:[#allocation2 + $0xe4] ss:$36 sps:$4 sm:$0xff]   ;;  %v2146_v3 = vld [vmem:[#allocation5 + $0x158] sm:$0xff]  }
  0x32   :  { %1813 = vmatprep.subr.bf16.mxu1 %v2089_v21  ;;  %v2137_v61 = vld [vmem:[#allocation5 + $0x1e0] sm:$0xff]   ;;  %v2142_v1 = vld [vmem:[#allocation2 + $0x12c] ss:$36 sps:$4 sm:$0xff]   ;;  %v2147_v5 = vld [vmem:[#allocation5 + $0x1d8] sm:$0xff]  }
  0x33   :  { %v2138_v62 = vld [vmem:[#allocation5 + $0x120] sm:$0xff]   ;;  %v2145_v4 = vld [vmem:[#allocation2 + $0x128] ss:$36 sps:$4 sm:$0xff]   ;;  %v2148_v6 = vld [vmem:[#allocation5 + $0x118] sm:$0xff]  }
  0x34   :  { %1750 = vmatpush3.bf16.msra.mxu0 %v2090_v22  ;;  %v2139_v63 = vld [vmem:[#allocation5 + $0x1a0] sm:$0xff]   ;;  %v2149_v7 = vld [vmem:[#allocation5 + $0x198] sm:$0xff]   ;;  %v2150_v8 = vld [vmem:[#allocation2 + $0x16c] ss:$36 sps:$4 sm:$0xff]  }
  0x35   :  { %1814 = vmatpush3.bf16.msra.mxu1 %v2091_v23  ;;  %1751 = vmatprep.subr.bf16.mxu0 %v2092_v24  ;;  %v2140_v0 = vld [vmem:[#allocation2 + $0x124] ss:$36 sps:$4 sm:$0xff]   ;;  %v2152_v9 = vld [vmem:[#allocation2 + $0x174] ss:$36 sps:$4 sm:$0xff]   ;;  %v2162_v17 = vld [vmem:[#allocation2 + $0x1bc] ss:$36 sps:$4 sm:$0xff]  }
  0x36   :  { %1815 = vmatprep.subr.bf16.mxu1 %v2093_v25  ;;  %v2144_v2 = vld [vmem:[#allocation2 + $0x120] ss:$36 sps:$4 sm:$0xff]   ;;  %v2156_v10 = vld [vmem:[#allocation5 + $0x150] sm:$0xff]   ;;  %v2154_v12 = vld [vmem:[#allocation2 + $0x168] ss:$36 sps:$4 sm:$0xff]  }
  0x37   :  { %v2157_v11 = vld [vmem:[#allocation5 + $0x1d0] sm:$0xff]   ;;  %v2166_v18 = vld [vmem:[#allocation5 + $0x148] sm:$0xff]   ;;  %v2165_v23 = vld [vmem:[#allocation2 + $0x1b8] ss:$36 sps:$4 sm:$0xff]  }
  0x38   :  { %1752 = vmatpush3.bf16.msra.mxu0 %v2094_v26  ;;  %v2158_v13 = vld [vmem:[#allocation5 + $0x110] sm:$0xff]   ;;  %v2167_v19 = vld [vmem:[#allocation5 + $0x1c8] sm:$0xff]   ;;  %v2170_v24 = vld [vmem:[#allocation2 + $0x1fc] ss:$36 sps:$4 sm:$0xff]  }
  0x39   :  { %1816 = vmatpush3.bf16.msra.mxu1 %v2095_v27  ;;  %1753 = vmatprep.subr.bf16.mxu0 %v2096_v28  ;;  %v2159_v14 = vld [vmem:[#allocation5 + $0x190] sm:$0xff]   ;;  %v2168_v20 = vld [vmem:[#allocation5 + $0x108] sm:$0xff]   ;;  %v2176_v26 = vld [vmem:[#allocation5 + $0x140] sm:$0xff]  }
  0x3a   :  { %1817 = vmatprep.subr.bf16.mxu1 %v2097_v29  ;;  %v2155_v15 = vld [vmem:[#allocation2 + $0x170] ss:$36 sps:$4 sm:$0xff]   ;;  %v2169_v21 = vld [vmem:[#allocation5 + $0x188] sm:$0xff]   ;;  %v2177_v27 = vld [vmem:[#allocation5 + $0x1c0] sm:$0xff]  }
  0x3b   :  { %v2160_v16 = vld [vmem:[#allocation2 + $0x1b4] ss:$36 sps:$4 sm:$0xff]   ;;  %v2172_v25 = vld [vmem:[#allocation2 + $0x204] ss:$36 sps:$4 sm:$0xff]  }
  0x3c   :  { %1754 = vmatpush3.bf16.msra.mxu0 %v2098_v30  ;;  %v2164_v22 = vld [vmem:[#allocation2 + $0x1b0] ss:$36 sps:$4 sm:$0xff]   ;;  %v2178_v28 = vld [vmem:[#allocation5 + $0x100] sm:$0xff]   ;;  %v2174_v30 = vld [vmem:[#allocation2 + $0x1f8] ss:$36 sps:$4 sm:$0xff]  }
  0x3d   :  { %1818 = vmatpush3.bf16.msra.mxu1 %v2099_v31  ;;  %1867 = vmatprep.subr.bf16.mxu0 %v2106_v36  ;;  %v2179_v29 = vld [vmem:[#allocation5 + $0x180] sm:$0xff]   ;;  %v2182_v33 = vld [vmem:[#allocation2 + $0x14] ss:$36 sps:$4 sm:$0xff]  }
  0x3e   :  { %1931 = vmatprep.subr.bf16.mxu1 %v2107_v37  ;;  %v2175_v31 = vld [vmem:[#allocation2 + $0x200] ss:$36 sps:$4 sm:$0xff]   ;;  %v2180_v35 = vld [vmem:[#allocation2 + $0x10] ss:$36 sps:$4 sm:$0xff]   ;;  %v2183_v36 = vld [vmem:[#allocation2 + $0x18] ss:$36 sps:$4 sm:$0xff]  }
  0x3f   :  { %1108 = vmatmul.mubr.bf16.vlgmr.msra.gmra.mxu0 %v2100_v32  ;;  %v2186_v32 = vld [vmem:[#allocation5 + $0x238] sm:$0xff]  }
  0x40   :  { %1205 = vmatmul.mubr.bf16.vlgmr.msra.gmra.mxu1 %v2103_v34  ;;  %1868 = vmatpush3.bf16.msra.mxu0 %v2108_v38  ;;  %v2185_v34 = vld [vmem:[#allocation2 + $0x1c] ss:$36 sps:$4 sm:$0xff]   ;;  %v2189_v38 = vld [vmem:[#allocation2 + $0x64] ss:$36 sps:$4 sm:$0xff]  }
  0x41   :  { %1932 = vmatpush3.bf16.msra.mxu1 %v2109_v39  ;;  %1115 = vmatprep.mubr.bf16.mxu0 %v2110_v40  ;;  %v2187_v37 = vld [vmem:[#allocation2 + $0x5c] ss:$36 sps:$4 sm:$0xff]   ;;  %v2193_v39 = vld [vmem:[#allocation5 + $0x230] sm:$0xff]   ;;  %v2200_v40 = vld [vmem:[#allocation5 + $0x228] sm:$0xff]  }
  0x42   :  { %1212 = vmatprep.mubr.bf16.mxu1 %v2112_v41  ;;  %1869 = vmatprep.subr.bf16.mxu0 %v2116_v44  ;;  %v2191_v41 = vld [vmem:[#allocation2 + $0x58] ss:$36 sps:$4 sm:$0xff]   ;;  %v2196_v44 = vld [vmem:[#allocation2 + $0xac] ss:$36 sps:$4 sm:$0xff]  }
  0x43   :  { %1933 = vmatprep.subr.bf16.mxu1 %v2117_v45  ;;  %v2207_v45 = vld [vmem:[#allocation5 + $0x220] sm:$0xff]  }
  0x44   :  { %1870 = vmatpush3.bf16.msra.mxu0 %v2118_v46  ;;  %v2214_v46 = vld [vmem:[#allocation5 + $0x218] sm:$0xff]  }
  0x45   :  { %1934 = vmatpush3.bf16.msra.mxu1 %v2119_v47  ;;  %1871 = vmatprep.subr.bf16.mxu0 %v2126_v52  ;;  %v2198_v47 = vld [vmem:[#allocation2 + $0xa0] ss:$36 sps:$4 sm:$0xff]   ;;  %v2205_v52 = vld [vmem:[#allocation2 + $0xe8] ss:$36 sps:$4 sm:$0xff]  }
  0x46   :  { %1935 = vmatprep.subr.bf16.mxu1 %v2127_v53  ;;  %v2228_v53 = vld [vmem:[#allocation5 + $0x208] sm:$0xff]  }
  0x47   :  { %1116 = vmatmul.mubr.bf16.gmra.mxu0 %v2114_v42  ;;  %v2192_v42 = vld [vmem:[#allocation2 + $0x60] ss:$36 sps:$4 sm:$0xff]  }
  0x48   :  { %1213 = vmatmul.mubr.bf16.gmra.mxu1 %v2115_v43  ;;  %1123 = vmatprep.mubr.bf16.mxu0 %v2120_v48  ;;  %v2194_v43 = vld [vmem:[#allocation2 + $0xa4] ss:$36 sps:$4 sm:$0xff]  }
  0x49   :  { %1220 = vmatprep.mubr.bf16.mxu1 %v2122_v49  ;;  %1872 = vmatpush3.bf16.msra.mxu0 %v2128_v54  ;;  %v2199_v48 = vld [vmem:[#allocation2 + $0xa8] ss:$36 sps:$4 sm:$0xff]   ;;  %v2206_v54 = vld [vmem:[#allocation2 + $0xf0] ss:$36 sps:$4 sm:$0xff]  }
  0x4a   :  { %1936 = vmatpush3.bf16.msra.mxu1 %v2129_v55  ;;  %1873 = vmatprep.subr.bf16.mxu0 %v2136_v60  ;;  %v2201_v49 = vld [vmem:[#allocation2 + $0xec] ss:$36 sps:$4 sm:$0xff]   ;;  %v2208_v55 = vld [vmem:[#allocation2 + $0x134] ss:$36 sps:$4 sm:$0xff]   ;;  %v2215_v60 = vld [vmem:[#allocation2 + $0x17c] ss:$36 sps:$4 sm:$0xff]  }
  0x4b   :  { %1937 = vmatprep.subr.bf16.mxu1 %v2137_v61  ;;  %v2217_v61 = vld [vmem:[#allocation2 + $0x184] ss:$36 sps:$4 sm:$0xff]  }
  0x4d   :  { %1874 = vmatpush3.bf16.msra.mxu0 %v2138_v62  ;;  %v2219_v62 = vld [vmem:[#allocation2 + $0x178] ss:$36 sps:$4 sm:$0xff]  }
  0x4e   :  { %1938 = vmatpush3.bf16.msra.mxu1 %v2139_v63  ;;  %1875 = vmatprep.subr.bf16.mxu0 %v2146_v3  ;;  %v2220_v63 = vld [vmem:[#allocation2 + $0x180] ss:$36 sps:$4 sm:$0xff]   ;;  %v2227_v3 = vld [vmem:[#allocation2 + $0x1c8] ss:$36 sps:$4 sm:$0xff]  }
  0x4f   :  { %1124 = vmatmul.mubr.bf16.gmra.mxu0 %v2124_v50  ;;  %1939 = vmatprep.subr.bf16.mxu1 %v2147_v5  ;;  %v2203_v50 = vld [vmem:[#allocation2 + $0xf4] ss:$36 sps:$4 sm:$0xff]  }
  0x50   :  { %1221 = vmatmul.mubr.bf16.gmra.mxu1 %v2125_v51  ;;  %1131 = vmatprep.mubr.bf16.mxu0 %v2130_v56  ;;  %v2221_v51 = vld [vmem:[#allocation5 + $0x210] sm:$0xff]   ;;  %v2210_v56 = vld [vmem:[#allocation2 + $0x13c] ss:$36 sps:$4 sm:$0xff]  }
  0x51   :  { %1228 = vmatprep.mubr.bf16.mxu1 %v2132_v57  ;;  %1876 = vmatpush3.bf16.msra.mxu0 %v2148_v6  ;;  %v2235_v57 = vld [vmem:[#allocation5 + $0x200] sm:$0xff]   ;;  %v2231_v5 = vld [vmem:[#allocation2 + $0x214] ss:$36 sps:$4 sm:$0xff]   ;;  %v2233_v6 = vld [vmem:[#allocation2 + $0x208] ss:$36 sps:$4 sm:$0xff]  }
  0x52   :  { %1940 = vmatpush3.bf16.msra.mxu1 %v2149_v7  ;;  %1877 = vmatprep.subr.bf16.mxu0 %v2156_v10  ;;  %v2234_v7 = vld [vmem:[#allocation2 + $0x210] ss:$36 sps:$4 sm:$0xff]   ;;  %v2238_v10 = vld [vmem:[#allocation2 + $0x68] ss:$36 sps:$4 sm:$0xff]  }
  0x53   :  { %1941 = vmatprep.subr.bf16.mxu1 %v2157_v11  ;;  %v2239_v11 = vld [vmem:[#allocation2 + $0x188] ss:$36 sps:$4 sm:$0xff]  }
  0x55   :  { %1878 = vmatpush3.bf16.msra.mxu0 %v2158_v13  ;;  %v2241_v13 = vld [vmem:[#allocation2 + $0x1d0] ss:$36 sps:$4 sm:$0xff]  }
  0x56   :  { %1942 = vmatpush3.bf16.msra.mxu1 %v2159_v14  ;;  %1879 = vmatprep.subr.bf16.mxu0 %v2166_v18  ;;  %v2242_v14 = vld [vmem:[#allocation2 + $0xf8] ss:$36 sps:$4 sm:$0xff]   ;;  %v2348_v18 = vld [vmem:[%s2506_s2] ss:$0 sm:$0xff]  ;;  %s2316_s2 = smov [#allocation7]  }
  0x57   :  { %1132 = vmatmul.mubr.bf16.gmra.mxu0 %v2134_v58  ;;  %1943 = vmatprep.subr.bf16.mxu1 %v2167_v19  ;;  %v2212_v58 = vld [vmem:[#allocation2 + $0x130] ss:$36 sps:$4 sm:$0xff]   ;;  %s1581_s26 = sshll.u32 %s2316_s2, 4  ;;  %s1582_s26 = int_to_ptr.vmem [resolvable:$true] %s1581_s26 }
  0x58   :  { %1229 = vmatmul.mubr.bf16.gmra.mxu1 %v2135_v59  ;;  %1139 = vmatprep.mubr.bf16.mxu0 %v2140_v0  ;;  %v2213_v59 = vld [vmem:[#allocation2 + $0x138] ss:$36 sps:$4 sm:$0xff]   ;;  %v2222_v0 = vld [vmem:[#allocation2 + $0x1c4] ss:$36 sps:$4 sm:$0xff]   ;;  %s2284_s27 = scalar_lea.vmem %s1582_s26, 2048  ;;  %p2289_p11 = scmp.lt.s32.totalorder %s1582_s26, %s1582_s26 }
  0x59   :  { %1236 = vmatprep.mubr.bf16.mxu1 %v2142_v1  ;;  %1880 = vmatpush3.bf16.msra.mxu0 %v2168_v20  ;;  %v2224_v1 = vld [vmem:[#allocation2 + $0x1cc] ss:$36 sps:$4 sm:$0xff]   ;;  %p2285_p10 = scmp.ne.s32.totalorder %s1582_s26, %s2284_s27  ;;  %p2290_p12 = scmp.lt.s32.totalorder %s2284_s27, %s2284_s27 }
  0x5a   :  { %1944 = vmatpush3.bf16.msra.mxu1 %v2169_v21  ;;  %1881 = vmatprep.subr.bf16.mxu0 %v2176_v26 }
  0x5b   :  { %1945 = vmatprep.subr.bf16.mxu1 %v2177_v27  ;;  %p2291_p13 = por %p2290_p12, %p2289_p11 }
  0x5d   :  { %1882 = vmatpush3.bf16.msra.mxu0 %v2178_v28  ;;  %p2292_p0 = pnand %p2291_p13, %p2285_p10 }
  0x5e   :  { %1946 = vmatpush3.bf16.msra.mxu1 %v2179_v29  ;;  %2011 = vmatprep.subr.bf16.mxu0 %v2186_v32 }
  0x5f   :  { %1140 = vmatmul.mubr.bf16.gmra.mxu0 %v2144_v2  ;;  %2043 = vmatprep.subr.bf16.mxu1 %v2186_v32  ;;  %v2226_v2 = vld [vmem:[#allocation2 + $0x1c0] ss:$36 sps:$4 sm:$0xff]  }
  0x60   :  { %1237 = vmatmul.mubr.bf16.gmra.mxu1 %v2145_v4  ;;  %1147 = vmatprep.mubr.bf16.mxu0 %v2150_v8  ;;  %v2229_v4 = vld [vmem:[#allocation2 + $0x20c] ss:$36 sps:$4 sm:$0xff]   ;;  %v2236_v8 = vld [vmem:[#allocation2 + $0x20] ss:$36 sps:$4 sm:$0xff]  }
  0x61   :  { %1244 = vmatprep.mubr.bf16.mxu1 %v2152_v9  ;;  %v2237_v9 = vld [vmem:[#allocation2 + $0x140] ss:$36 sps:$4 sm:$0xff]  }
  0x67   :  { %1148 = vmatmul.mubr.bf16.gmra.mxu0 %v2154_v12  ;;  %v2240_v12 = vld [vmem:[#allocation2 + $0xb0] ss:$36 sps:$4 sm:$0xff]  }
  0x68   :  { %1245 = vmatmul.mubr.bf16.gmra.mxu1 %v2155_v15  ;;  %1155 = vmatprep.mubr.bf16.mxu0 %v2160_v16  ;;  %v2243_v15 = vld [vmem:[#allocation2 + $0x218] ss:$36 sps:$4 sm:$0xff]  }
  0x69   :  { %1252 = vmatprep.mubr.bf16.mxu1 %v2162_v17 }
  0x6f   :  { %1156 = vmatmul.mubr.bf16.gmra.mxu0 %v2164_v22 }
  0x70   :  { %1253 = vmatmul.mubr.bf16.gmra.mxu1 %v2165_v23  ;;  %1163 = vmatprep.mubr.bf16.mxu0 %v2170_v24 }
  0x71   :  { %1260 = vmatprep.mubr.bf16.mxu1 %v2172_v25 }
  0x77   :  { %1164 = vmatmul.mubr.bf16.gmra.mxu0 %v2174_v30 }
  0x78   :  { %1261 = vmatmul.mubr.bf16.gmra.mxu1 %v2175_v31  ;;  %1301 = vmatprep.mubr.bf16.mxu0 %v2182_v33 }
  0x79   :  { %1398 = vmatprep.mubr.bf16.mxu1 %v2185_v34 }
  0x7f   :  { %1302 = vmatmul.mubr.bf16.vlgmr.msra.gmra.mxu0 %v2180_v35 }
  0x80   :  { %1399 = vmatmul.mubr.bf16.vlgmr.msra.gmra.mxu1 %v2183_v36  ;;  %2012 = vmatpush3.bf16.msra.mxu0 %v2186_v32 }
  0x81   :  { %2051 = vmatpush3.bf16.msra.mxu1 %v2186_v32  ;;  %1309 = vmatprep.mubr.bf16.mxu0 %v2187_v37 }
  0x82   :  { %1406 = vmatprep.mubr.bf16.mxu1 %v2189_v38  ;;  %2013 = vmatprep.subr.bf16.mxu0 %v2193_v39 }
  0x83   :  { %2044 = vmatprep.subr.bf16.mxu1 %v2193_v39 }
  0x84   :  { %2014 = vmatpush3.bf16.msra.mxu0 %v2193_v39 }
  0x85   :  { %2052 = vmatpush3.bf16.msra.mxu1 %v2193_v39  ;;  %2015 = vmatprep.subr.bf16.mxu0 %v2200_v40 }
  0x86   :  { %2045 = vmatprep.subr.bf16.mxu1 %v2200_v40 }
  0x87   :  { %1310 = vmatmul.mubr.bf16.gmra.mxu0 %v2191_v41 }
  0x88   :  { %1407 = vmatmul.mubr.bf16.gmra.mxu1 %v2192_v42  ;;  %1317 = vmatprep.mubr.bf16.mxu0 %v2194_v43 }
  0x89   :  { %1414 = vmatprep.mubr.bf16.mxu1 %v2196_v44  ;;  %2016 = vmatpush3.bf16.msra.mxu0 %v2200_v40 }
  0x8a   :  { %2053 = vmatpush3.bf16.msra.mxu1 %v2200_v40  ;;  %2017 = vmatprep.subr.bf16.mxu0 %v2207_v45 }
  0x8b   :  { %2046 = vmatprep.subr.bf16.mxu1 %v2207_v45 }
  0x8d   :  { %2018 = vmatpush3.bf16.msra.mxu0 %v2207_v45 }
  0x8e   :  { %2054 = vmatpush3.bf16.msra.mxu1 %v2207_v45  ;;  %2019 = vmatprep.subr.bf16.mxu0 %v2214_v46 }
  0x8f   :  { %1318 = vmatmul.mubr.bf16.gmra.mxu0 %v2198_v47  ;;  %2047 = vmatprep.subr.bf16.mxu1 %v2214_v46 }
  0x90   :  { %1415 = vmatmul.mubr.bf16.gmra.mxu1 %v2199_v48  ;;  %1325 = vmatprep.mubr.bf16.mxu0 %v2201_v49 }
  0x91   :  { %1422 = vmatprep.mubr.bf16.mxu1 %v2203_v50  ;;  %2020 = vmatpush3.bf16.msra.mxu0 %v2214_v46 }
  0x92   :  { %2055 = vmatpush3.bf16.msra.mxu1 %v2214_v46  ;;  %2021 = vmatprep.subr.bf16.mxu0 %v2221_v51 }
  0x93   :  { %2048 = vmatprep.subr.bf16.mxu1 %v2221_v51 }
  0x95   :  { %2022 = vmatpush3.bf16.msra.mxu0 %v2221_v51 }
  0x96   :  { %2056 = vmatpush3.bf16.msra.mxu1 %v2221_v51  ;;  %2023 = vmatprep.subr.bf16.mxu0 %v2228_v53 }
  0x97   :  { %1326 = vmatmul.mubr.bf16.gmra.mxu0 %v2205_v52  ;;  %2049 = vmatprep.subr.bf16.mxu1 %v2228_v53 }
  0x98   :  { %1423 = vmatmul.mubr.bf16.gmra.mxu1 %v2206_v54  ;;  %1333 = vmatprep.mubr.bf16.mxu0 %v2208_v55 }
  0x99   :  { %1430 = vmatprep.mubr.bf16.mxu1 %v2210_v56  ;;  %2024 = vmatpush3.bf16.msra.mxu0 %v2228_v53 }
  0x9a   :  { %2057 = vmatpush3.bf16.msra.mxu1 %v2228_v53  ;;  %2025 = vmatprep.subr.bf16.mxu0 %v2235_v57 }
  0x9b   :  { %2050 = vmatprep.subr.bf16.mxu1 %v2235_v57 }
  0x9d   :  { %2026 = vmatpush3.bf16.msra.mxu0 %v2235_v57 }
  0x9e   :  { %2058 = vmatpush3.bf16.msra.mxu1 %v2235_v57 }
  0x9f   :  { %1334 = vmatmul.mubr.bf16.gmra.mxu0 %v2212_v58 }
  0xa0   :  { %1431 = vmatmul.mubr.bf16.gmra.mxu1 %v2213_v59  ;;  %1341 = vmatprep.mubr.bf16.mxu0 %v2215_v60 }
  0xa1   :  { %1438 = vmatprep.mubr.bf16.mxu1 %v2217_v61 }
  0xa7   :  { %1342 = vmatmul.mubr.bf16.gmra.mxu0 %v2219_v62 }
  0xa8   :  { %1439 = vmatmul.mubr.bf16.gmra.mxu1 %v2220_v63  ;;  %1349 = vmatprep.mubr.bf16.mxu0 %v2222_v0 }
  0xa9   :  { %1446 = vmatprep.mubr.bf16.mxu1 %v2224_v1 }
  0xaf   :  { %1350 = vmatmul.mubr.bf16.gmra.mxu0 %v2226_v2 }
  0xb0   :  { %1447 = vmatmul.mubr.bf16.gmra.mxu1 %v2227_v3  ;;  %1357 = vmatprep.mubr.bf16.mxu0 %v2229_v4 }
  0xb1   :  { %1454 = vmatprep.mubr.bf16.mxu1 %v2231_v5 }
  0xb7   :  { %1358 = vmatmul.mubr.bf16.gmra.mxu0 %v2233_v6 }
  0xb8   :  { %1455 = vmatmul.mubr.bf16.gmra.mxu1 %v2234_v7  ;;  %2027 = vmatprep.mubr.bf16.mxu0 %v2236_v8 }
  0xb9   :  { %2035 = vmatprep.mubr.bf16.mxu1 %v2237_v9 }
  0xbf   :  { %2028 = vmatmul.mubr.bf16.vlgmr.msra.gmra.mxu0 %v2238_v10 }
  0xc0   :  { %2036 = vmatmul.mubr.bf16.vlgmr.msra.gmra.mxu1 %v2239_v11  ;;  %2031 = vmatprep.mubr.bf16.mxu0 %v2240_v12 }
  0xc1   :  { %2039 = vmatprep.mubr.bf16.mxu1 %v2241_v13 }
  0xc7   :  { %2032 = vmatmul.mubr.bf16.gmra.mxu0 %v2242_v14 }
  0xc8   :  { %2040 = vmatmul.mubr.bf16.gmra.mxu1 %v2243_v15 }
  0xff   :  { %v1755_v16 = vpop.f32.mrf.mxu0 }
 0x100   :  { %v1819_v17 = vpop.f32.mrf.mxu1 }
 0x101   :  { %v1756_v19 = vpop.f32.mrf.mxu0 }
 0x102   :  { %v1757_v20 = vadd.f32 %v1756_v19, %v1755_v16  ;;  %v1820_v21 = vpop.f32.mrf.mxu1 }
 0x103   :  { %v1821_v22 = vadd.f32 %v1820_v21, %v1819_v17  ;;  %v1758_v23 = vpop.f32.mrf.mxu0 }
 0x104   :  { %v1110_v24 = vadd.f32 %v1757_v20, %v2348_v18  ;;  %v1822_v25 = vpop.f32.mrf.mxu1 }
 0x105   :  { %v1759_v26 = vpop.f32.mrf.mxu0 }
 0x106   :  { %v2351_v27 = vadd.f32 %v1821_v22, %v1110_v24  ;;  %v1760_v28 = vadd.f32 %v1759_v26, %v1758_v23  ;;  %v1823_v29 = vpop.f32.mrf.mxu1 }
 0x107   :  { %v1824_v30 = vadd.f32 %v1823_v29, %v1822_v25  ;;  %v1761_v31 = vpop.f32.mrf.mxu0 }
 0x108   :  { %v1113_v32 = vadd.f32 %v1760_v28, %v2348_v18  ;;  %v1825_v33 = vpop.f32.mrf.mxu1 }
 0x109   :  { %v1762_v34 = vpop.f32.mrf.mxu0 }
 0x10a   :  { %v2354_v35 = vadd.f32 %v1824_v30, %v1113_v32  ;;  %v1763_v36 = vadd.f32 %v1762_v34, %v1761_v31  ;;  %v1826_v37 = vpop.f32.mrf.mxu1 }
 0x10b   :  { %v1827_v38 = vadd.f32 %v1826_v37, %v1825_v33  ;;  %v1764_v39 = vpop.f32.mrf.mxu0 }
 0x10c   :  { %v1118_v40 = vadd.f32 %v1763_v36, %v2348_v18  ;;  %v1828_v41 = vpop.f32.mrf.mxu1 }
 0x10d   :  { %v1765_v42 = vpop.f32.mrf.mxu0 }
 0x10e   :  { %v2357_v43 = vadd.f32 %v1827_v38, %v1118_v40  ;;  %v1766_v44 = vadd.f32 %v1765_v42, %v1764_v39  ;;  %v1829_v45 = vpop.f32.mrf.mxu1 }
 0x10f   :  { %v1830_v46 = vadd.f32 %v1829_v45, %v1828_v41  ;;  %v1767_v47 = vpop.f32.mrf.mxu0 }
 0x110   :  { %v1121_v48 = vadd.f32 %v1766_v44, %v2348_v18  ;;  %v1831_v49 = vpop.f32.mrf.mxu1 }
 0x111   :  { %v1768_v50 = vpop.f32.mrf.mxu0 }
 0x112   :  { %v2360_v51 = vadd.f32 %v1830_v46, %v1121_v48  ;;  %v1769_v52 = vadd.f32 %v1768_v50, %v1767_v47  ;;  %v1832_v53 = vpop.f32.mrf.mxu1 }
 0x113   :  { %v1833_v54 = vadd.f32 %v1832_v53, %v1831_v49  ;;  %v1770_v55 = vpop.f32.mrf.mxu0 }
 0x114   :  { %v1126_v56 = vadd.f32 %v1769_v52, %v2348_v18  ;;  %v1834_v57 = vpop.f32.mrf.mxu1 }
 0x115   :  { %v1771_v58 = vpop.f32.mrf.mxu0 }
 0x116   :  { %v2363_v59 = vadd.f32 %v1833_v54, %v1126_v56  ;;  %v1772_v60 = vadd.f32 %v1771_v58, %v1770_v55  ;;  %v1835_v61 = vpop.f32.mrf.mxu1 }
 0x117   :  { %v1836_v62 = vadd.f32 %v1835_v61, %v1834_v57  ;;  %v1773_v63 = vpop.f32.mrf.mxu0 }
 0x118   :  { %v1129_v0 = vadd.f32 %v1772_v60, %v2348_v18  ;;  %v1837_v1 = vpop.f32.mrf.mxu1 }
 0x119   :  { %v1774_v2 = vpop.f32.mrf.mxu0 }
 0x11a   :  { %v2366_v3 = vadd.f32 %v1836_v62, %v1129_v0  ;;  %v1775_v4 = vadd.f32 %v1774_v2, %v1773_v63  ;;  %v1838_v5 = vpop.f32.mrf.mxu1 }
 0x11b   :  { %v1839_v6 = vadd.f32 %v1838_v5, %v1837_v1  ;;  %v1776_v7 = vpop.f32.mrf.mxu0 }
 0x11c   :  { %2508 = vst [vmem:[#allocation11_spill] sm:$0xff] %v2366_v3  ;;  %v1134_v8 = vadd.f32 %v1775_v4, %v2348_v18  ;;  %v1840_v9 = vpop.f32.mrf.mxu1 }
 0x11d   :  { %v1777_v10 = vpop.f32.mrf.mxu0 }
 0x11e   :  { %v2369_v11 = vadd.f32 %v1839_v6, %v1134_v8  ;;  %v1778_v12 = vadd.f32 %v1777_v10, %v1776_v7  ;;  %v1841_v13 = vpop.f32.mrf.mxu1 }
 0x11f   :  { %v1842_v14 = vadd.f32 %v1841_v13, %v1840_v9  ;;  %v1779_v15 = vpop.f32.mrf.mxu0 }
 0x120   :  { %v1137_v16 = vadd.f32 %v1778_v12, %v2348_v18  ;;  %v1843_v17 = vpop.f32.mrf.mxu1 }
 0x121   :  { %v1780_v19 = vpop.f32.mrf.mxu0 }
 0x122   :  { %v2372_v20 = vadd.f32 %v1842_v14, %v1137_v16  ;;  %v1781_v21 = vadd.f32 %v1780_v19, %v1779_v15  ;;  %v1844_v22 = vpop.f32.mrf.mxu1 }
 0x123   :  { %v1845_v23 = vadd.f32 %v1844_v22, %v1843_v17  ;;  %v1782_v24 = vpop.f32.mrf.mxu0 }
 0x124   :  { %2509 = vst [vmem:[#allocation12_spill] sm:$0xff] %v2372_v20  ;;  %v1142_v25 = vadd.f32 %v1781_v21, %v2348_v18  ;;  %v1846_v26 = vpop.f32.mrf.mxu1 }
 0x125   :  { %v1783_v28 = vpop.f32.mrf.mxu0 }
 0x126   :  { %v2375_v29 = vadd.f32 %v1845_v23, %v1142_v25  ;;  %v1784_v30 = vadd.f32 %v1783_v28, %v1782_v24  ;;  %v1847_v31 = vpop.f32.mrf.mxu1 }
 0x127   :  { %v1848_v32 = vadd.f32 %v1847_v31, %v1846_v26  ;;  %v1785_v33 = vpop.f32.mrf.mxu0 }
 0x128   :  { %v1145_v34 = vadd.f32 %v1784_v30, %v2348_v18  ;;  %v1849_v36 = vpop.f32.mrf.mxu1 }
 0x129   :  { %v1786_v37 = vpop.f32.mrf.mxu0 }
 0x12a   :  { %v2378_v38 = vadd.f32 %v1848_v32, %v1145_v34  ;;  %v1787_v39 = vadd.f32 %v1786_v37, %v1785_v33  ;;  %v1850_v40 = vpop.f32.mrf.mxu1 }
 0x12b   :  { %v1851_v41 = vadd.f32 %v1850_v40, %v1849_v36  ;;  %v1788_v42 = vpop.f32.mrf.mxu0 }
 0x12c   :  { %v1150_v44 = vadd.f32 %v1787_v39, %v2348_v18  ;;  %v1852_v45 = vpop.f32.mrf.mxu1 }
 0x12d   :  { %v1789_v46 = vpop.f32.mrf.mxu0 }
 0x12e   :  { %v2381_v47 = vadd.f32 %v1851_v41, %v1150_v44  ;;  %v1790_v48 = vadd.f32 %v1789_v46, %v1788_v42  ;;  %v1853_v49 = vpop.f32.mrf.mxu1 }
 0x12f   :  { %v1854_v50 = vadd.f32 %v1853_v49, %v1852_v45  ;;  %v1791_v52 = vpop.f32.mrf.mxu0 }
 0x130   :  { %v1153_v53 = vadd.f32 %v1790_v48, %v2348_v18  ;;  %v1855_v54 = vpop.f32.mrf.mxu1 }
 0x131   :  { %v1792_v55 = vpop.f32.mrf.mxu0 }
 0x132   :  { %v2384_v56 = vadd.f32 %v1854_v50, %v1153_v53  ;;  %v1793_v57 = vadd.f32 %v1792_v55, %v1791_v52  ;;  %v1856_v58 = vpop.f32.mrf.mxu1 }
 0x133   :  { %v1857_v60 = vadd.f32 %v1856_v58, %v1855_v54  ;;  %v1794_v61 = vpop.f32.mrf.mxu0 }
 0x134   :  { %v1158_v62 = vadd.f32 %v1793_v57, %v2348_v18  ;;  %v1858_v63 = vpop.f32.mrf.mxu1 }
 0x135   :  { %v1795_v0 = vpop.f32.mrf.mxu0 }
 0x136   :  { %v2387_v1 = vadd.f32 %v1857_v60, %v1158_v62  ;;  %v1796_v2 = vadd.f32 %v1795_v0, %v1794_v61  ;;  %v1859_v4 = vpop.f32.mrf.mxu1 }
 0x137   :  { %v1860_v5 = vadd.f32 %v1859_v4, %v1858_v63  ;;  %v1797_v6 = vpop.f32.mrf.mxu0 }
 0x138   :  { %2510 = vst [vmem:[#allocation13_spill] sm:$0xff] %v2387_v1  ;;  %v1161_v7 = vadd.f32 %v1796_v2, %v2348_v18  ;;  %v1861_v8 = vpop.f32.mrf.mxu1 }
 0x139   :  { %v1798_v9 = vpop.f32.mrf.mxu0 }
 0x13a   :  { %v2390_v10 = vadd.f32 %v1860_v5, %v1161_v7  ;;  %v1799_v12 = vadd.f32 %v1798_v9, %v1797_v6  ;;  %v1862_v13 = vpop.f32.mrf.mxu1 }
 0x13b   :  { %v1863_v14 = vadd.f32 %v1862_v13, %v1861_v8  ;;  %v1800_v15 = vpop.f32.mrf.mxu0 }
 0x13c   :  { %2511 = vst [vmem:[#allocation14_spill] sm:$0xff] %v2390_v10  ;;  %v1166_v16 = vadd.f32 %v1799_v12, %v2348_v18  ;;  %v1864_v17 = vpop.f32.mrf.mxu1 }
 0x13d   :  { %v1801_v19 = vpop.f32.mrf.mxu0 }
 0x13e   :  { %v2393_v21 = vadd.f32 %v1863_v14, %v1166_v16  ;;  %v1802_v22 = vadd.f32 %v1801_v19, %v1800_v15  ;;  %v1865_v23 = vpop.f32.mrf.mxu1 }
 0x13f   :  { %v1866_v24 = vadd.f32 %v1865_v23, %v1864_v17  ;;  %v1883_v25 = vpop.f32.mrf.mxu0 }
 0x140   :  { %2512 = vst [vmem:[#allocation15_spill] sm:$0xff] %v2393_v21  ;;  %v1169_v26 = vadd.f32 %v1802_v22, %v2348_v18  ;;  %v2396_v28 = vpop.f32.mrf.mxu1 }
 0x141   :  { %v1884_v30 = vpop.f32.mrf.mxu0 }
 0x142   :  { %v2398_v31 = vadd.f32 %v1866_v24, %v1169_v26  ;;  %v2400_v32 = vpop.f32.mrf.mxu1 }
 0x143   :  { %v1886_v33 = vpop.f32.mrf.mxu0 }
 0x144   :  { %2513 = vst [vmem:[#allocation16_spill] sm:$0xff] %v2398_v31  ;;  %v2402_v34 = vpop.f32.mrf.mxu1  ;;  %v1885_v31 = vadd.f32 %v1884_v30, %v1883_v25  ;;  %v1949_v25 = vadd.f32 %v2400_v32, %v2396_v28 }
 0x145   :  { %v1887_v36 = vpop.f32.mrf.mxu0 }
 0x146   :  { %v2404_v37 = vpop.f32.mrf.mxu1 }
 0x147   :  { %v1889_v39 = vpop.f32.mrf.mxu0  ;;  %v1952_v30 = vadd.f32 %v2404_v37, %v2402_v34 }
 0x148   :  { %v2406_v40 = vpop.f32.mrf.mxu1 }
 0x149   :  { %v1890_v41 = vpop.f32.mrf.mxu0 }
 0x14a   :  { %v2408_v42 = vpop.f32.mrf.mxu1 }
 0x14b   :  { %v1892_v18 = vpop.f32.mrf.mxu0 }
 0x14c   :  { %v2410_v44 = vpop.f32.mrf.mxu1 }
 0x14d   :  { %v1893_v45 = vpop.f32.mrf.mxu0 }
 0x14e   :  { %v2412_v46 = vpop.f32.mrf.mxu1 }
 0x14f   :  { %v1895_v48 = vpop.f32.mrf.mxu0  ;;  %v1958_v34 = vadd.f32 %v2412_v46, %v2410_v44 }
 0x150   :  { %v2414_v49 = vpop.f32.mrf.mxu1 }
 0x151   :  { %2514 = vst [vmem:[#allocation17_spill] sm:$0xff] %v2414_v49  ;;  %v1896_v50 = vpop.f32.mrf.mxu0  ;;  %v1891_v49 = vadd.f32 %v1890_v41, %v1889_v39 }
 0x152   :  { %v2416_v52 = vpop.f32.mrf.mxu1  ;;  %v1897_v41 = vadd.f32 %v1896_v50, %v1895_v48 }
 0x153   :  { %2515 = vst [vmem:[#allocation18_spill] sm:$0xff] %v2416_v52  ;;  %v2418_v53 = vpop.f32.mrf.mxu0  ;;  %v1888_v52 = vadd.f32 %v1887_v36, %v1886_v33 }
 0x154   :  { %2516 = vst [vmem:[#allocation19_spill] sm:$0xff] %v2418_v53  ;;  %v2420_v54 = vpop.f32.mrf.mxu1  ;;  %v1320_v50 = vadd.f32 %v1897_v41, %v2363_v59 }
 0x155   :  { %2517 = vst [vmem:[#allocation20_spill] sm:$0xff] %v2420_v54  ;;  %v2422_v55 = vpop.f32.mrf.mxu0 }
 0x156   :  { %2518 = vst [vmem:[#allocation21_spill] sm:$0xff] %v2422_v55  ;;  %v2424_v57 = vpop.f32.mrf.mxu1  ;;  %v1894_v55 = vadd.f32 %v1893_v45, %v1892_v18 }
 0x157   :  { %2519 = vst [vmem:[#allocation22_spill] sm:$0xff] %v2424_v57  ;;  %v1901_v58 = vpop.f32.mrf.mxu0 }
 0x158   :  { %v2426_v60 = vpop.f32.mrf.mxu1 }
 0x159   :  { %2520 = vst [vmem:[#allocation23_spill] sm:$0xff] %v2426_v60  ;;  %v1902_v61 = vpop.f32.mrf.mxu0 }
 0x15a   :  { %v2428_v62 = vpop.f32.mrf.mxu1 }
 0x15b   :  { %2521 = vst [vmem:[#allocation24_spill] sm:$0xff] %v2428_v62  ;;  %v2430_v63 = vpop.f32.mrf.mxu0 }
 0x15c   :  { %v2432_v0 = vpop.f32.mrf.mxu1 }
 0x15d   :  { %2522 = vst [vmem:[#allocation25_spill] sm:$0xff] %v2432_v0  ;;  %v2434_v2 = vpop.f32.mrf.mxu0 }
 0x15e   :  { %v2436_v4 = vpop.f32.mrf.mxu1 }
 0x15f   :  { %2523 = vst [vmem:[#allocation26_spill] sm:$0xff] %v2436_v4  ;;  %v1907_v5 = vpop.f32.mrf.mxu0 }
 0x160   :  { %v1971_v6 = vpop.f32.mrf.mxu1 }
 0x161   :  { %v1908_v7 = vpop.f32.mrf.mxu0 }
 0x162   :  { %v1972_v8 = vpop.f32.mrf.mxu1  ;;  %v1909_v21 = vadd.f32 %v1908_v7, %v1907_v5 }
 0x163   :  { %v1910_v9 = vpop.f32.mrf.mxu0 }
 0x164   :  { %v2438_v12 = vpop.f32.mrf.mxu1 }
 0x165   :  { %v1911_v13 = vpop.f32.mrf.mxu0 }
 0x166   :  { %v2440_v14 = vpop.f32.mrf.mxu1 }
 0x167   :  { %2524 = vst [vmem:[#allocation27_spill] sm:$0xff] %v2440_v14  ;;  %v1913_v15 = vpop.f32.mrf.mxu0 }
 0x168   :  { %v1977_v16 = vpop.f32.mrf.mxu1 }
 0x169   :  { %v1914_v17 = vpop.f32.mrf.mxu0 }
 0x16a   :  { %v1978_v19 = vpop.f32.mrf.mxu1  ;;  %v1915_v62 = vadd.f32 %v1914_v17, %v1913_v15 }
 0x16b   :  { %v1916_v22 = vpop.f32.mrf.mxu0  ;;  %v1979_v45 = vadd.f32 %v1978_v19, %v1977_v16  ;;  %v2534_v16 = vld [vmem:[#allocation24_spill] sm:$0xff]  ;;  %v2535_v19 = vld [vmem:[#allocation13_spill] sm:$0xff] }
 0x16c   :  { %v1980_v23 = vpop.f32.mrf.mxu1  ;;  %v1344_v33 = vadd.f32 %v1915_v62, %v2381_v47  ;;  %v1903_v47 = vadd.f32 %v1902_v61, %v1901_v58  ;;  %v1973_v62 = vadd.f32 %v1972_v8, %v1971_v6 }
 0x16d   :  { %v1917_v24 = vpop.f32.mrf.mxu0 }
 0x16e   :  { %v1981_v26 = vpop.f32.mrf.mxu1  ;;  %v1918_v36 = vadd.f32 %v1917_v24, %v1916_v22  ;;  %v1441_v48 = vadd.f32 %v1979_v45, %v1344_v33  ;;  %v1328_v61 = vadd.f32 %v1903_v47, %v2369_v11  ;;  %v2533_v11 = vld [vmem:[#allocation23_spill] sm:$0xff]  ;;  %v2537_v33 = vld [vmem:[#allocation17_spill] sm:$0xff] }
 0x16f   :  { %v1919_v57 = vpop.f32.mrf.mxu0  ;;  %v1982_v5 = vadd.f32 %v1981_v26, %v1980_v23  ;;  %v1967_v17 = vadd.f32 %v2534_v16, %v2533_v11 }
 0x170   :  { %v2442_v54 = vpop.f32.mrf.mxu1 }
 0x171   :  { %2525 = vst [vmem:[#allocation28_spill] sm:$0xff] %v2442_v54  ;;  %v1920_v10 = vpop.f32.mrf.mxu0  ;;  %v1304_v54 = vadd.f32 %v1885_v31, %v2351_v27  ;;  %v1955_v27 = vadd.f32 %v2408_v42, %v2406_v40  ;;  %v1315_v31 = vadd.f32 %v1894_v55, %v2360_v51  ;;  %v1347_v40 = vadd.f32 %v1918_v36, %v2384_v56  ;;  %v2538_v36 = vld [vmem:[#allocation18_spill] sm:$0xff] }
 0x172   :  { %v2444_v4 = vpop.f32.mrf.mxu1  ;;  %v1921_v7 = vadd.f32 %v1920_v10, %v1919_v57  ;;  %v1906_v56 = vadd.f32 %v2434_v2, %v2430_v63 }
 0x173   :  { %2526 = vst [vmem:[#allocation29_spill] sm:$0xff] %v2444_v4  ;;  %v2446_v0 = vpop.f32.mrf.mxu0  ;;  %v1307_v4 = vadd.f32 %v1888_v52, %v2354_v35  ;;  %v1912_v35 = vadd.f32 %v1911_v13, %v1910_v9  ;;  %v1401_v32 = vadd.f32 %v1949_v25, %v1304_v54  ;;  %v1412_v54 = vadd.f32 %v1958_v34, %v1315_v31  ;;  %v2531_v13 = vld [vmem:[#allocation19_spill] sm:$0xff]  ;;  %v2542_v34 = vld [vmem:[#allocation16_spill] sm:$0xff] }
 0x174   :  { %2527 = vst [vmem:[#allocation30_spill] sm:$0xff] %v2446_v0  ;;  %v2448_v3 = vpop.f32.mrf.mxu1  ;;  %v1312_v0 = vadd.f32 %v1891_v49, %v2357_v43  ;;  %v1336_v43 = vadd.f32 %v1909_v21, %v2375_v29  ;;  %v1444_v57 = vadd.f32 %v1982_v5, %v1347_v40  ;;  %v1352_v22 = vadd.f32 %v1921_v7, %v2535_v19  ;;  %v2544_v40 = vld [vmem:[#allocation25_spill] sm:$0xff] }
 0x175   :  { %2528 = vst [vmem:[#allocation31_spill] sm:$0xff] %v2448_v3  ;;  %v2450_v20 = vpop.f32.mrf.mxu0  ;;  %v1404_v52 = vadd.f32 %v1952_v30, %v1307_v4  ;;  %v1339_v29 = vadd.f32 %v1912_v35, %v2378_v38  ;;  %v2530_v38 = vld [vmem:[#allocation15_spill] sm:$0xff] }
 0x176   :  { %v2452_v1 = vpop.f32.mrf.mxu1  ;;  %v1409_v49 = vadd.f32 %v1955_v27, %v1312_v0  ;;  %v1433_v58 = vadd.f32 %v1973_v62, %v1336_v43  ;;  %v2539_v27 = vld [vmem:[#allocation12_spill] sm:$0xff]  ;;  %v1425_v43 = vadd.f32 %v1967_v17, %v1328_v61 }
 0x177   :  { %v1925_v60 = vpop.f32.mrf.mxu0  ;;  %v1331_v31 = vadd.f32 %v1906_v56, %v2539_v27 }
 0x178   :  { %v1989_v53 = vpop.f32.mrf.mxu1  ;;  %v2540_v45 = vld [vmem:[#allocation28_spill] sm:$0xff] }
 0x179   :  { %v1926_v14 = vpop.f32.mrf.mxu0 }
 0x17a   :  { %v1990_v3 = vpop.f32.mrf.mxu1  ;;  %v1927_v51 = vadd.f32 %v1926_v14, %v1925_v60  ;;  %v2529_v60 = vld [vmem:[#allocation27_spill] sm:$0xff]  ;;  %v2532_v14 = vld [vmem:[#allocation21_spill] sm:$0xff] }
 0x17b   :  { %v1928_v39 = vpop.f32.mrf.mxu0  ;;  %v1976_v0 = vadd.f32 %v2529_v60, %v2438_v12  ;;  %v1900_v15 = vadd.f32 %v2532_v14, %v2531_v13  ;;  %v2536_v23 = vld [vmem:[#allocation30_spill] sm:$0xff]  ;;  %v1991_v26 = vadd.f32 %v1990_v3, %v1989_v53 }
 0x17c   :  { %v2465_v18 = vpop.f32.mrf.mxu1  ;;  %v1360_v6 = vadd.f32 %v1927_v51, %v2530_v38  ;;  %v1924_v24 = vadd.f32 %v2450_v20, %v2536_v23  ;;  %v2545_v51 = vld [vmem:[#allocation26_spill] sm:$0xff] }
 0x17d   :  { %v1929_v28 = vpop.f32.mrf.mxu0  ;;  %v1436_v12 = vadd.f32 %v1976_v0, %v1339_v29 }
 0x17e   :  { %v1993_v37 = vpop.f32.mrf.mxu1  ;;  %v1930_v8 = vadd.f32 %v1929_v28, %v1928_v39  ;;  %v1961_v39 = vadd.f32 %v2538_v36, %v2537_v33  ;;  %v2541_v28 = vld [vmem:[#allocation29_spill] sm:$0xff]  ;;  %v1457_v53 = vadd.f32 %v1991_v26, %v1360_v6 }
 0x17f   :  { %v2029_v42 = vpop.f32.mrf.mxu0 }
 0x180   :  { %v1506_v21 = vadd.f32 %v2029_v42, %v1409_v49  ;;  %v2037_v55 = vpop.f32.mrf.mxu1  ;;  %v1363_v47 = vadd.f32 %v1930_v8, %v2542_v34  ;;  %v2543_v49 = vld [vmem:[#allocation11_spill] sm:$0xff]  ;;  %v1970_v42 = vadd.f32 %v2545_v51, %v2544_v40 }
 0x181   :  { %v1538_v44 = vadd.f32 %v2037_v55, %v1441_v48  ;;  %v1497_v46 = vpop.f32.mrf.mxu0  ;;  %v1323_v62 = vadd.f32 %v1900_v15, %v2543_v49 }
 0x182   :  { %1562 = vst [vmem:[#allocation7 + $0x10] sm:$0xff] %v1506_v21  ;;  %v1498_v59 = vadd.f32 %v1497_v46, %v1401_v32  ;;  %v1529_v4 = vpop.f32.mrf.mxu1  ;;  %v1985_v32 = vadd.f32 %v2541_v28, %v2540_v45  ;;  %v2546_v21 = vld [vmem:[#allocation14_spill] sm:$0xff]  ;;  %v2547_v46 = vld [vmem:[#allocation20_spill] sm:$0xff]  ;;  %v1428_v0 = vadd.f32 %v1970_v42, %v1331_v31 }
 0x183   :  { %1570 = vst [vmem:[#allocation7 + $0x50] sm:$0xff] %v1538_v44  ;;  %v1530_v9 = vadd.f32 %v1529_v4, %v1433_v58  ;;  %v2030_v10 = vpop.f32.mrf.mxu0  ;;  %v1355_v55 = vadd.f32 %v1924_v24, %v2546_v21  ;;  %v2548_v58 = vld [vmem:[#allocation22_spill] sm:$0xff] }
 0x184   :  { %1560 = vst [vmem:[#allocation7] sm:$0xff] %v1498_v59  ;;  %v1509_v63 = vadd.f32 %v2030_v10, %v1412_v54  ;;  %v2038_v2 = vpop.f32.mrf.mxu1  ;;  %v1994_v54 = vadd.f32 %v1993_v37, %v2465_v18  ;;  %v1449_v44 = vadd.f32 %v1985_v32, %v1352_v22  ;;  %v1964_v61 = vadd.f32 %v2548_v58, %v2547_v46  ;;  %v2549_v59 = vld [vmem:[#allocation31_spill] sm:$0xff] }
 0x185   :  { %1568 = vst [vmem:[#allocation7 + $0x40] sm:$0xff] %v1530_v9  ;;  %v1541_v25 = vadd.f32 %v2038_v2, %v1444_v57  ;;  %v1500_v30 = vpop.f32.mrf.mxu0  ;;  %v1988_v4 = vadd.f32 %v2452_v1, %v2549_v59 }
 0x186   :  { %1563 = vst [vmem:[#allocation7 + $0x18] sm:$0xff] %v1509_v63  ;;  %v1501_v41 = vadd.f32 %v1500_v30, %v1404_v52  ;;  %v1532_v35 = vpop.f32.mrf.mxu1  ;;  %v1417_v52 = vadd.f32 %v1961_v39, %v1320_v50  ;;  %v1460_v6 = vadd.f32 %v1994_v54, %v1363_v47  ;;  %v1420_v8 = vadd.f32 %v1964_v61, %v1323_v62 }
 0x187   :  { %1571 = vst [vmem:[#allocation7 + $0x58] sm:$0xff] %v1541_v25  ;;  %v1533_v20 = vadd.f32 %v1532_v35, %v1436_v12  ;;  %v2033_v3 = vpop.f32.mrf.mxu0  ;;  %v1452_v57 = vadd.f32 %v1988_v4, %v1355_v55 }
 0x188   :  { %1561 = vst [vmem:[#allocation7 + $0x8] sm:$0xff] %v1501_v41  ;;  %v1522_v48 = vadd.f32 %v2033_v3, %v1425_v43  ;;  %v2041_v29 = vpop.f32.mrf.mxu1 }
 0x189   :  { %1569 = vst [vmem:[#allocation7 + $0x48] sm:$0xff] %v1533_v20  ;;  %v1554_v5 = vadd.f32 %v2041_v29, %v1457_v53  ;;  %v1513_v7 = vpop.f32.mrf.mxu0 }
 0x18a   :  { %1566 = vst [vmem:[#allocation7 + $0x30] sm:$0xff] %v1522_v48  ;;  %v1514_v56 = vadd.f32 %v1513_v7, %v1417_v52  ;;  %v1545_v60 = vpop.f32.mrf.mxu1 }
 0x18b   :  { %1574 = vst [vmem:[#allocation7 + $0x70] sm:$0xff] %v1554_v5  ;;  %v1546_v50 = vadd.f32 %v1545_v60, %v1449_v44  ;;  %v2034_v38 = vpop.f32.mrf.mxu0 }
 0x18c   :  { %1564 = vst [vmem:[#allocation7 + $0x20] sm:$0xff] %v1514_v56  ;;  %v1525_v18 = vadd.f32 %v2034_v38, %v1428_v0  ;;  %v2042_v37 = vpop.f32.mrf.mxu1 }
 0x18d   :  { %1572 = vst [vmem:[#allocation7 + $0x60] sm:$0xff] %v1546_v50  ;;  %v1557_v9 = vadd.f32 %v2042_v37, %v1460_v6  ;;  %v1516_v10 = vpop.f32.mrf.mxu0 }
 0x18e   :  { %1567 = vst [vmem:[#allocation7 + $0x38] sm:$0xff] %v1525_v18  ;;  %v1517_v13 = vadd.f32 %v1516_v10, %v1420_v8  ;;  %v1548_v14 = vpop.f32.mrf.mxu1 }
 0x18f   :  { %1575 = vst [vmem:[#allocation7 + $0x78] sm:$0xff] %v1557_v9  ;;  %v1549_v1 = vadd.f32 %v1548_v14, %v1452_v57 }
 0x190   :  { %1565 = vst [vmem:[#allocation7 + $0x28] sm:$0xff] %v1517_v13 }
 0x191   :  { %1573 = vst [vmem:[#allocation7 + $0x68] sm:$0xff] %v1549_v1 }
 0x192   :  { %2295 = shalt.err (!%p2292_p0)
}
 0x193   :  { %s2317_s28 = smov 128   ;;  %s2318_s29 = smov 8  }
 0x194   :  { %1587 = dma.vmem_to_hbm [thread:$0]  %s1582_s26, 2048, %s2507_s3, [#allocation4], %s2317_s28, %s2317_s28, %s2318_s29  }
 0x195   :  { %2308 = dma.done.wait [#allocation4], 2048  }
 0x196   :  { %2309 = vsyncadd [#allocation4], 4294965248 }
 0x197   :  { %1591 = vsyncpa [#allocation3], 1 }
 0x198   :  { %1592 = vsyncpa [#allocation6], 1 }
 0x199   :  { %1593 = vsyncpa [#allocation4], 1 }

</bundles_post_ra>
